<compile_context>
chip_gen: v6e
topology: v6e:2x2x1
jax: 0.10.0
libtpu: 0.0.40
codegen_flags: <defaults>
</compile_context>

<pallas_src>
import functools
import math

import jax
import jax.numpy as jnp
from jax.experimental import pallas as pl
from jax.experimental.pallas import tpu as pltpu


def _attn_kernel(x_ref, wqkv_ref, wo_ref, o_ref, *,
                 head_num, dk, seq_len, block_b, compute_dtype):
    """One grid step processes block_b * seq_len tokens of the flattened batch.

    x_ref    : (block_b*L, dm)   activations, already in compute_dtype
    wqkv_ref : (dm, 3*H*dk)      fused [Wq*inv_sqrt_dk | Wk | Wv], (in, out) layout
    wo_ref   : (H, dk, dm)       output projection split per head, (in, out) layout
    o_ref    : (block_b*L, dm)   float32
    """
    H, L = head_num, seq_len
    n_rows = block_b * L          # tokens handled by this grid step
    bh = H * block_b              # fused (head, batch) einsum batch axis

    x = x_ref[...]                                                     # (BN, dm)

    # --- fused QKV projection (scale pre-folded into the Q columns): one MXU pass
    qkv = jnp.dot(x, wqkv_ref[...], preferred_element_type=jnp.float32)  # (BN, 3hk) f32

    # --- single head-split relayout (instead of 12 lane slices + 3 stacks):
    #     (BN, 3*H*dk) -> (BN, 3H, dk) -> rank-3 transpose -> (3H, BN, dk),
    #     then free leading-axis regroups.  Batch ordering is (head, batch).
    qkv3 = jnp.transpose(qkv.reshape(n_rows, 3 * H, dk), (1, 0, 2))    # (3H, BN, dk)
    q = qkv3[0 * H:1 * H].reshape(bh, L, dk).astype(compute_dtype)     # (bh, L, dk)
    k = qkv3[1 * H:2 * H].reshape(bh, L, dk).astype(compute_dtype)
    v = qkv3[2 * H:3 * H].reshape(bh, L, dk).astype(compute_dtype)

    # --- scores + softmax, batched over (head, batch) in one einsum chain ---
    s = jnp.einsum("bqd,bkd->bqk", q, k,
                   preferred_element_type=jnp.float32)                 # (bh, L, L) f32
    s = s - jnp.max(s, axis=-1, keepdims=True)
    p = jnp.exp(s)
    # EUP reciprocal + multiply instead of a VPU divide.
    p = p * pl.reciprocal(jnp.sum(p, axis=-1, keepdims=True), approx=True)
    # (dropout on p is identity in eval mode)

    a = jnp.einsum("bqk,bkd->bqd", p.astype(compute_dtype), v,
                   preferred_element_type=jnp.float32)                 # (bh, L, dk) f32

    # --- output projection contracting over BOTH head and dk (unrolled
    #     einsum('hnd,hdm->nm')): per-head 2-D matmuls accumulated in f32.  The
    #     (bh, L, dk) -> (H, BN, dk) reshape is a free leading-axis regroup, so the
    #     head sum folds into accumulation with no (H, L, dm) intermediate and no
    #     inverse head-merge relayout.
    a_h = a.reshape(H, n_rows, dk).astype(compute_dtype)               # (H, BN, dk)
    wo = wo_ref[...]                                                   # (H, dk, dm)
    out = jnp.dot(a_h[0], wo[0], preferred_element_type=jnp.float32)   # (BN, dm) f32
    for h in range(1, H):
        out = out + jnp.dot(a_h[h], wo[h], preferred_element_type=jnp.float32)

    o_ref[...] = out.astype(o_ref.dtype)                               # one full-block store


def prepare_attn_weights(wq, wk, wv, wo, *, head_num, dk,
                         compute_dtype=jnp.float32):
    """One-time weight prep (do NOT redo per forward call).

    wq/wk/wv: PyTorch nn.Linear layout (H*dk, dm); wo: (dm, H*dk).
    Returns:
      wqkv_t   : (dm, 3*H*dk)  fused QKV weight, (in, out) layout, 1/sqrt(dk)
                               folded into the Q columns
      wo_heads : (H, dk, dm)   output projection split per head, (in, out) layout
    """
    hk, dm = wq.shape
    assert hk == head_num * dk
    scale = 1.0 / math.sqrt(dk)
    wqkv_t = jnp.concatenate([wq.T * scale, wk.T, wv.T], axis=1).astype(compute_dtype)
    wo_heads = wo.T.reshape(head_num, dk, dm).astype(compute_dtype)
    return wqkv_t, wo_heads


def attn_forward(x, wqkv_t, wo_heads, *, head_num, dk, block_b=None,
                 compute_dtype=jnp.float32):
    """x: (B, L, dm) f32; wqkv_t/wo_heads from prepare_attn_weights()."""
    B, L, dm = x.shape
    H = head_num
    hk = H * dk
    assert wqkv_t.shape == (dm, 3 * hk)
    assert wo_heads.shape == (H, dk, dm)

    if block_b is None:
        # Below ~0.35us of per-batch MXU work the per-step overhead dominates, so
        # fold the whole batch into one step.  Otherwise expose >=2 "parallel"
        # steps (v7x has 2 TensorCores) and up to 8 for input-DMA pipelining.
        flops_per_batch = 2 * L * dm * 3 * hk + 4 * H * L * L * dk + 2 * L * hk * dm
        if B >= 2 and flops_per_batch >= 250_000:
            block_b = max(1, B // min(B, 8))
        else:
            block_b = B
    assert B % block_b == 0, "block_b must divide the batch"
    grid = (B // block_b,)
    n_rows = block_b * L
    assert L % 8 == 0 and n_rows % 8 == 0, "rows must be sublane(8)-aligned"

    # Per-step VMEM budget: double-buffered ins/outs + f32 intermediates.
    isz = jnp.dtype(compute_dtype).itemsize
    vmem_est = (2 * isz * (n_rows * dm + dm * 3 * hk + H * dk * dm)    # inputs (x2 buf)
                + 2 * 4 * n_rows * dm                                  # output (x2 buf)
                + 4 * (n_rows * 3 * hk                                 # qkv
                       + 3 * n_rows * hk                               # q, k, v relayout
                       + 2 * block_b * H * L * L                       # scores + probs
                       + n_rows * hk                                   # attention output
                       + n_rows * dm))                                 # proj accumulator
    V5E_SCOPED_DEFAULT = 16 * 1024 * 1024   # tightest default scoped limit (v5e)
    if vmem_est <= V5E_SCOPED_DEFAULT:
        vmem_limit = None                   # fits every generation's default limit
    else:
        # Raise the scoped limit, staying well under v7x's 64 MiB physical VMEM.
        vmem_limit = int(min(2 * vmem_est, 48 * 1024 * 1024))
        assert vmem_est < vmem_limit, (
            "attention tile too large for VMEM; needs a flash-style KV-tiled loop")

    # Cast x once in the wrapper: halves its DMA bytes on the bf16 path and removes
    # the in-kernel cast.  Output stays f32 for downstream consumers.
    x_flat = x.reshape(B * L, dm).astype(compute_dtype)

    kernel = functools.partial(_attn_kernel, head_num=H, dk=dk, seq_len=L,
                               block_b=block_b, compute_dtype=compute_dtype)

    cp = dict(dimension_semantics=("parallel",))
    if vmem_limit is not None:
        cp["vmem_limit_bytes"] = vmem_limit

    out_flat = pl.pallas_call(
        kernel,
        out_shape=jax.ShapeDtypeStruct((B * L, dm), jnp.float32),
        grid_spec=pltpu.PrefetchScalarGridSpec(
            num_scalar_prefetch=0,
            grid=grid,
            in_specs=[
                pl.BlockSpec((n_rows, dm), lambda i: (i, 0)),
                pl.BlockSpec((dm, 3 * hk), lambda i: (0, 0)),
                pl.BlockSpec((H, dk, dm), lambda i: (0, 0, 0)),
            ],
            out_specs=pl.BlockSpec((n_rows, dm), lambda i: (i, 0)),
        ),
        compiler_params=pltpu.CompilerParams(**cp),
    )(x_flat, wqkv_t, wo_heads)
    return out_flat.reshape(B, L, dm)


def attn_reference(x, wq, wk, wv, wo, *, head_num, dk):
    """Pure-JAX reference mirroring the PyTorch forward (eval mode)."""
    B, L, dm = x.shape
    q = (x @ wq.T).reshape(B, L, head_num, dk).transpose(0, 2, 1, 3)
    k = (x @ wk.T).reshape(B, L, head_num, dk).transpose(0, 2, 1, 3)
    v = (x @ wv.T).reshape(B, L, head_num, dk).transpose(0, 2, 1, 3)
    s = jnp.einsum("bhqd,bhkd->bhqk", q, k) / math.sqrt(dk)
    p = jax.nn.softmax(s, axis=-1)
    a = jnp.einsum("bhqk,bhkd->bhqd", p, v)
    a = a.transpose(0, 2, 1, 3).reshape(B, L, head_num * dk)
    return a @ wo.T


if __name__ == "__main__":
    # Config: dm=32, dk=8, head_num=4  ->  H*dk = 32
    batch, seq_len, dm, dk, head_num = 2, 8, 32, 8, 4
    hk = head_num * dk

    key = jax.random.PRNGKey(0)
    kx, kq, kk, kv, ko = jax.random.split(key, 5)

    x = jax.random.normal(kx, (batch, seq_len, dm), dtype=jnp.float32)
    # nn.Linear weights, PyTorch layout (out_features, in_features), bias=False.
    bound_qkv = 1.0 / math.sqrt(dm)
    bound_o = 1.0 / math.sqrt(hk)
    wq = jax.random.uniform(kq, (hk, dm), jnp.float32, -bound_qkv, bound_qkv)
    wk = jax.random.uniform(kk, (hk, dm), jnp.float32, -bound_qkv, bound_qkv)
    wv = jax.random.uniform(kv, (hk, dm), jnp.float32, -bound_qkv, bound_qkv)
    wo = jax.random.uniform(ko, (dm, hk), jnp.float32, -bound_o, bound_o)

    ref = attn_reference(x, wq, wk, wv, wo, head_num=head_num, dk=dk)

    # --- f32 MXU-operand path (correct choice on v5e; tight tolerance) ---
    wqkv_f32, woh_f32 = prepare_attn_weights(
        wq, wk, wv, wo, head_num=head_num, dk=dk, compute_dtype=jnp.float32)
    out = attn_forward(x, wqkv_f32, woh_f32, head_num=head_num, dk=dk,
                       compute_dtype=jnp.float32)
    out = jax.block_until_ready(out)
    assert out.shape == (batch, seq_len, dm)
    assert jnp.allclose(out, ref, atol=2e-3, rtol=2e-3), "f32 mismatch vs reference"

    # --- bf16 MXU-operand path (use on v6e/v7x only); accum + softmax stay f32 ---
    wqkv_bf, woh_bf = prepare_attn_weights(
        wq, wk, wv, wo, head_num=head_num, dk=dk, compute_dtype=jnp.bfloat16)
    out_bf = attn_forward(x, wqkv_bf, woh_bf, head_num=head_num, dk=dk,
                          compute_dtype=jnp.bfloat16)
    out_bf = jax.block_until_ready(out_bf)
    assert jnp.allclose(out_bf, ref, atol=5e-2, rtol=5e-2), "bf16 mismatch vs reference"

    print("KERNEL_OK")
</pallas_src>

<mosaic_0001>
module attributes {stable_mosaic.version = 11 : i64} {
  func.func @_attn_kernel(%arg0: i32, %arg1: memref<16x32xf32, #tpu.memory_space<vmem>>, %arg2: memref<32x96xf32, #tpu.memory_space<vmem>>, %arg3: memref<4x8x32xf32, #tpu.memory_space<vmem>>, %arg4: memref<16x32xf32, #tpu.memory_space<vmem>>) attributes {dimension_semantics = [#tpu.dimension_semantics<parallel>], iteration_bounds = array<i64: 1>, scalar_prefetch = 0 : i64, scratch_operands = 0 : i64, tpu.core_type = #tpu.core_type<tc>, window_params = [{transform_indices = @transform_0, window_bounds = array<i64: 16, 32>}, {pipeline_mode = #tpu.pipeline_mode<synchronous>, transform_indices = @transform_1, window_bounds = array<i64: 32, 96>}, {pipeline_mode = #tpu.pipeline_mode<synchronous>, transform_indices = @transform_2, window_bounds = array<i64: 4, 8, 32>}, {transform_indices = @transform_3, window_bounds = array<i64: 16, 32>}]} {
    %c0 = arith.constant 0 : index
    %c0_0 = arith.constant 0 : index
    %0 = vector.load %arg1[%c0, %c0_0] : memref<16x32xf32, #tpu.memory_space<vmem>>, vector<16x32xf32>
    %c0_1 = arith.constant 0 : index
    %c0_2 = arith.constant 0 : index
    %1 = vector.load %arg2[%c0_1, %c0_2] : memref<32x96xf32, #tpu.memory_space<vmem>>, vector<32x96xf32>
    %cst = arith.constant dense<0.000000e+00> : vector<16x96xf32>
    %2 = tpu.matmul %0, %1, %cst {dimension_numbers = #tpu.dot_dimension_numbers<[1], [0], [0], [1], [0, 0, 1, 1], [], []>} : vector<16x32xf32>, vector<32x96xf32>, vector<16x96xf32> -> vector<16x96xf32>
    %3 = vector.shape_cast %2 : vector<16x96xf32> to vector<16x12x8xf32>
    %4 = tpu.transpose %3, [1, 0, 2] : vector<16x12x8xf32> -> vector<12x16x8xf32>
    %5 = vector.extract_strided_slice %4 {offsets = [0, 0, 0], sizes = [4, 16, 8], strides = [1, 1, 1]} : vector<12x16x8xf32> to vector<4x16x8xf32>
    %6 = vector.shape_cast %5 : vector<4x16x8xf32> to vector<8x8x8xf32>
    %7 = vector.extract_strided_slice %4 {offsets = [4, 0, 0], sizes = [4, 16, 8], strides = [1, 1, 1]} : vector<12x16x8xf32> to vector<4x16x8xf32>
    %8 = vector.shape_cast %7 : vector<4x16x8xf32> to vector<8x8x8xf32>
    %9 = vector.extract_strided_slice %4 {offsets = [8, 0, 0], sizes = [4, 16, 8], strides = [1, 1, 1]} : vector<12x16x8xf32> to vector<4x16x8xf32>
    %10 = vector.shape_cast %9 : vector<4x16x8xf32> to vector<8x8x8xf32>
    "tpu.trace_start"() <{level = 10 : i32, message = "bqd,bkd->bqk"}> : () -> ()
    %cst_3 = arith.constant dense<0.000000e+00> : vector<8x8x8xf32>
    %11 = tpu.matmul %6, %8, %cst_3 {dimension_numbers = #tpu.dot_dimension_numbers<[2], [2], [1], [1], [0, 0, 0, 1, 1, 1], [0], [0]>} : vector<8x8x8xf32>, vector<8x8x8xf32>, vector<8x8x8xf32> -> vector<8x8x8xf32>
    "tpu.trace_stop"() : () -> ()
    %cst_4 = arith.constant dense<0xFF800000> : vector<8x8xf32>
    %12 = vector.multi_reduction <maximumf>, %11, %cst_4 [2] : vector<8x8x8xf32> to vector<8x8xf32>
    %13 = vector.shape_cast %12 : vector<8x8xf32> to vector<8x8x1xf32>
    %14 = vector.broadcast %13 : vector<8x8x1xf32> to vector<8x8x8xf32>
    %15 = arith.subf %11, %14 : vector<8x8x8xf32>
    %16 = math.exp %15 : vector<8x8x8xf32>
    %cst_5 = arith.constant dense<0.000000e+00> : vector<8x8xf32>
    %17 = vector.multi_reduction <add>, %16, %cst_5 [2] : vector<8x8x8xf32> to vector<8x8xf32>
    %18 = vector.shape_cast %17 : vector<8x8xf32> to vector<8x8x1xf32>
    %19 = tpu.reciprocal %18 {approx = true} : vector<8x8x1xf32> -> vector<8x8x1xf32>
    %20 = vector.broadcast %19 : vector<8x8x1xf32> to vector<8x8x8xf32>
    %21 = arith.mulf %16, %20 : vector<8x8x8xf32>
    "tpu.trace_start"() <{level = 10 : i32, message = "bqk,bkd->bqd"}> : () -> ()
    %cst_6 = arith.constant dense<0.000000e+00> : vector<8x8x8xf32>
    %22 = tpu.matmul %21, %10, %cst_6 {dimension_numbers = #tpu.dot_dimension_numbers<[2], [1], [1], [2], [0, 0, 0, 1, 1, 2], [0], [0]>} : vector<8x8x8xf32>, vector<8x8x8xf32>, vector<8x8x8xf32> -> vector<8x8x8xf32>
    "tpu.trace_stop"() : () -> ()
    %23 = vector.shape_cast %22 : vector<8x8x8xf32> to vector<4x16x8xf32>
    %c0_7 = arith.constant 0 : index
    %c0_8 = arith.constant 0 : index
    %c0_9 = arith.constant 0 : index
    %24 = vector.load %arg3[%c0_7, %c0_8, %c0_9] : memref<4x8x32xf32, #tpu.memory_space<vmem>>, vector<4x8x32xf32>
    %25 = vector.extract_strided_slice %23 {offsets = [0, 0, 0], sizes = [1, 16, 8], strides = [1, 1, 1]} : vector<4x16x8xf32> to vector<1x16x8xf32>
    %26 = vector.shape_cast %25 : vector<1x16x8xf32> to vector<16x8xf32>
    %27 = vector.extract_strided_slice %24 {offsets = [0, 0, 0], sizes = [1, 8, 32], strides = [1, 1, 1]} : vector<4x8x32xf32> to vector<1x8x32xf32>
    %28 = vector.shape_cast %27 : vector<1x8x32xf32> to vector<8x32xf32>
    %cst_10 = arith.constant dense<0.000000e+00> : vector<16x32xf32>
    %29 = tpu.matmul %26, %28, %cst_10 {dimension_numbers = #tpu.dot_dimension_numbers<[1], [0], [0], [1], [0, 0, 1, 1], [], []>} : vector<16x8xf32>, vector<8x32xf32>, vector<16x32xf32> -> vector<16x32xf32>
    %30 = vector.extract_strided_slice %23 {offsets = [1, 0, 0], sizes = [1, 16, 8], strides = [1, 1, 1]} : vector<4x16x8xf32> to vector<1x16x8xf32>
    %31 = vector.shape_cast %30 : vector<1x16x8xf32> to vector<16x8xf32>
    %32 = vector.extract_strided_slice %24 {offsets = [1, 0, 0], sizes = [1, 8, 32], strides = [1, 1, 1]} : vector<4x8x32xf32> to vector<1x8x32xf32>
    %33 = vector.shape_cast %32 : vector<1x8x32xf32> to vector<8x32xf32>
    %cst_11 = arith.constant dense<0.000000e+00> : vector<16x32xf32>
    %34 = tpu.matmul %31, %33, %cst_11 {dimension_numbers = #tpu.dot_dimension_numbers<[1], [0], [0], [1], [0, 0, 1, 1], [], []>} : vector<16x8xf32>, vector<8x32xf32>, vector<16x32xf32> -> vector<16x32xf32>
    %35 = arith.addf %29, %34 : vector<16x32xf32>
    %36 = vector.extract_strided_slice %23 {offsets = [2, 0, 0], sizes = [1, 16, 8], strides = [1, 1, 1]} : vector<4x16x8xf32> to vector<1x16x8xf32>
    %37 = vector.shape_cast %36 : vector<1x16x8xf32> to vector<16x8xf32>
    %38 = vector.extract_strided_slice %24 {offsets = [2, 0, 0], sizes = [1, 8, 32], strides = [1, 1, 1]} : vector<4x8x32xf32> to vector<1x8x32xf32>
    %39 = vector.shape_cast %38 : vector<1x8x32xf32> to vector<8x32xf32>
    %cst_12 = arith.constant dense<0.000000e+00> : vector<16x32xf32>
    %40 = tpu.matmul %37, %39, %cst_12 {dimension_numbers = #tpu.dot_dimension_numbers<[1], [0], [0], [1], [0, 0, 1, 1], [], []>} : vector<16x8xf32>, vector<8x32xf32>, vector<16x32xf32> -> vector<16x32xf32>
    %41 = arith.addf %35, %40 : vector<16x32xf32>
    %42 = vector.extract_strided_slice %23 {offsets = [3, 0, 0], sizes = [1, 16, 8], strides = [1, 1, 1]} : vector<4x16x8xf32> to vector<1x16x8xf32>
    %43 = vector.shape_cast %42 : vector<1x16x8xf32> to vector<16x8xf32>
    %44 = vector.extract_strided_slice %24 {offsets = [3, 0, 0], sizes = [1, 8, 32], strides = [1, 1, 1]} : vector<4x8x32xf32> to vector<1x8x32xf32>
    %45 = vector.shape_cast %44 : vector<1x8x32xf32> to vector<8x32xf32>
    %cst_13 = arith.constant dense<0.000000e+00> : vector<16x32xf32>
    %46 = tpu.matmul %43, %45, %cst_13 {dimension_numbers = #tpu.dot_dimension_numbers<[1], [0], [0], [1], [0, 0, 1, 1], [], []>} : vector<16x8xf32>, vector<8x32xf32>, vector<16x32xf32> -> vector<16x32xf32>
    %47 = arith.addf %41, %46 : vector<16x32xf32>
    %c0_14 = arith.constant 0 : index
    %c0_15 = arith.constant 0 : index
    %48 = vector.load %arg4[%c0_14, %c0_15] : memref<16x32xf32, #tpu.memory_space<vmem>>, vector<16x32xf32>
    tpu.vector_store %arg4[%c0_14, %c0_15], %47 {strides = array<i32>} : memref<16x32xf32, #tpu.memory_space<vmem>>, vector<16x32xf32>,
    return
  }
  func.func @transform_0(%arg0: i32) -> (i32, i32) {
    %c0_i32 = arith.constant 0 : i32
    %c0_i32_0 = arith.constant 0 : i32
    return %arg0, %c0_i32 : i32, i32
  }
  func.func @transform_1(%arg0: i32) -> (i32, i32) {
    %c0_i32 = arith.constant 0 : i32
    %c0_i32_0 = arith.constant 0 : i32
    %c0_i32_1 = arith.constant 0 : i32
    return %c0_i32, %c0_i32_0 : i32, i32
  }
  func.func @transform_2(%arg0: i32) -> (i32, i32, i32) {
    %c0_i32 = arith.constant 0 : i32
    %c0_i32_0 = arith.constant 0 : i32
    %c0_i32_1 = arith.constant 0 : i32
    %c0_i32_2 = arith.constant 0 : i32
    return %c0_i32, %c0_i32_0, %c0_i32_1 : i32, i32, i32
  }
  func.func @transform_3(%arg0: i32) -> (i32, i32) {
    %c0_i32 = arith.constant 0 : i32
    %c0_i32_0 = arith.constant 0 : i32
    return %arg0, %c0_i32 : i32, i32
  }
}

</mosaic_0001>

<bundles_post_ra>
// kernel: tpu_custom_call.1
= control target key start
LH: loop header
LB: loop body
LE: loop exit
PB: predicated region body
PF: predicated region fallthrough
CT: control target
= control target key end

     0   :  { %8 = vsyncpa [#allocation3], 0  ;;  %s3397_s0 = inlined_call_operand.hbm [shape: f32[16,32], index: 0, kind: input, shape index: {}]   ;;  %s3398_s1 = inlined_call_operand.hbm [shape: f32[32,96], index: 1, kind: input, shape index: {}]   ;;  %s3399_s2 = inlined_call_operand.hbm [shape: f32[4,8,32], index: 2, kind: input, shape index: {}]   ;;  %s3400_s3 = inlined_call_operand.hbm [shape: f32[16,32], index: 3, kind: output, shape index: {}]  }
   0x1   :  { %9 = vsyncpa [#allocation6], 0 }
   0x2   :  { %10 = vsyncpa [#allocation4], 0  ;;  %s3015_s12 = smov [#allocation5]   ;;  %s3016_s14 = smov [#allocation2]  }
   0x3   :  { %s28_s13 = sshll.u32 %s3015_s12, 4  ;;  %s16_s15 = sshll.u32 %s3016_s14, 4  ;;  %s29_s13 = int_to_ptr.vmem [resolvable:$true] %s28_s13  ;;  %s17_s15 = int_to_ptr.vmem [resolvable:$true] %s16_s15 }
   0x4   :  { %s2937_s16 = scalar_lea.vmem %s29_s13, 512  ;;  %p2942_p1 = scmp.lt.s32.totalorder %s29_s13, %s29_s13 }
   0x5   :  { %p2938_p0 = scmp.ne.s32.totalorder %s29_s13, %s2937_s16  ;;  %p2943_p2 = scmp.lt.s32.totalorder %s2937_s16, %s2937_s16 }
   0x7   :  { %p2944_p3 = por %p2943_p2, %p2942_p1 }
   0x9   :  { %p2945_p4 = pnand %p2944_p3, %p2938_p0 }
   0xb   :  { %2948 = shalt.err (!%p2945_p4)
}
   0xc   :  { %s3017_s17 = smov 128   ;;  %s3018_s18 = smov 8  }
   0xd   :  { %34 = dma.hbm_to_vmem [thread:$0]  %s3398_s1, 512, %s29_s13, [#allocation6], %s3017_s17, %s3017_s17, %s3018_s18  }
   0xe   :  { %s2957_s21 = scalar_lea.vmem %s17_s15, 256  ;;  %p2962_p6 = scmp.lt.s32.totalorder %s17_s15, %s17_s15 }
   0xf   :  { %p2958_p5 = scmp.ne.s32.totalorder %s17_s15, %s2957_s21  ;;  %p2963_p7 = scmp.lt.s32.totalorder %s2957_s21, %s2957_s21 }
  0x11   :  { %p2964_p8 = por %p2963_p7, %p2962_p6 }
  0x13   :  { %p2965_p9 = pnand %p2964_p8, %p2958_p5 }
  0x15   :  { %2968 = shalt.err (!%p2965_p9)
}
  0x16   :  { %22 = dma.hbm_to_vmem [thread:$0]  %s3397_s0, 256, %s17_s15, [#allocation3], %s3017_s17, %s3017_s17, %s3018_s18  }
  0x17   :  { %s3019_s24 = smov [#allocation7]  }
  0x18   :  { %s40_s25 = sshll.u32 %s3019_s24, 4  ;;  %s41_s25 = int_to_ptr.vmem [resolvable:$true] %s40_s25 }
  0x19   :  { %s2977_s26 = scalar_lea.vmem %s41_s25, 512  ;;  %p2982_p11 = scmp.lt.s32.totalorder %s41_s25, %s41_s25 }
  0x1a   :  { %p2978_p10 = scmp.ne.s32.totalorder %s41_s25, %s2977_s26  ;;  %p2983_p12 = scmp.lt.s32.totalorder %s2977_s26, %s2977_s26 }
  0x1c   :  { %p2984_p13 = por %p2983_p12, %p2982_p11 }
  0x1e   :  { %p2985_p0 = pnand %p2984_p13, %p2978_p10 }
  0x20   :  { %2988 = shalt.err (!%p2985_p0)
}
  0x21   :  { %46 = dma.hbm_to_vmem [thread:$0]  %s3399_s2, 512, %s41_s25, [#allocation6], %s3017_s17, %s3017_s17, %s3018_s18  }
  0x22   :  { %3009 = dma.done.wait [#allocation3], 256  }
  0x23   :  { %3010 = vsyncadd [#allocation3], 4294967040 }
  0x24   :  { %3011 = dma.done.wait [#allocation6], 1024  }
  0x25   :  { %3012 = vsyncadd [#allocation6], 4294966272  ;;  %vm62_vm0 = vcmask 261120   ;;  %v61_v0 = vld [vmem:[#allocation5 + $0x18] sm:$0xff]  ;;  %v60_v1 = vld [vmem:[#allocation5 + $0x10] sm:$0xff]  ;;  %s3020_s0 = smov 88   ;;  %v217_v11 = vlaneseq }
  0x26   :  { %2765 = vmatprep.subr.mxu0 %v61_v0  ;;  %v56_v2 = vld [vmem:[#allocation2] sm:$0xff]  ;;  %v59_v3 = vld [vmem:[#allocation5 + $0x8] sm:$0xff]  ;;  %v58_v4 = vld [vmem:[#allocation5] sm:$0xff]  ;;  %s3021_s2 = smov 96   ;;  %s3022_s28 = smov 72   ;;  %v3027_v8 = vmov 0.0  }
  0x27   :  { %2766 = vmatpush3.msra.mxu0 %v61_v0  ;;  %2773 = vmatprep.mubr.msk.f32.mxu0 %vm62_vm0, %v56_v2  ;;  %v57_v5 = vld [vmem:[#allocation2 + $0x8] sm:$0xff]  ;;  %s3023_s29 = smov 80   ;;  %s3024_s30 = smov 120   ;;  %vm3028_vm1 = vmmov 0   ;;  %v3029_v9 = vmov 1983009808  }
  0x28   :  { %2767 = vmatprep.subr.mxu0 %v60_v1  ;;  %s3025_s4 = smov 112   ;;  %s3026_s5 = smov 104   ;;  %2776 = vmatprep.subr.mxu1 %v3027_v8  ;;  %v215_v10 = vunpack.c.l.s4 %v3029_v9  ;;  %v3030_v12 = vmov 1934713408   ;;  %v218_v15 = vshrl.u32 %v217_v11, 7  ;;  %vm1028_vm2 = vcmask 64512  }
  0x29   :  { %2768 = vmatpush3.msra.mxu0 %v60_v1  ;;  %2778 = vmatprep.mubr.msk.f32.mxu1 %vm3028_vm1, %v3027_v8  ;;  %v279_v13 = vunpack.c.l.s4 %v3030_v12  ;;  %s3031_s6 = smov 56   ;;  %s3032_s7 = smov 64  }
  0x2a   :  { %2769 = vmatprep.subr.mxu0 %v59_v3  ;;  %v216_v14 = vunpack.c.0.s8 %v215_v10  ;;  %s3033_s8 = smov 48   ;;  %s3034_s9 = smov 40  }
  0x2b   :  { %2770 = vmatpush3.msra.mxu0 %v59_v3  ;;  %v280_v18 = vunpack.c.0.s8 %v279_v13  ;;  %s3035_s10 = smov [#allocation8]  }
  0x2c   :  { %2771 = vmatprep.subr.mxu0 %v58_v4  ;;  %v3100_v19 = vsub.s32 %v216_v14, %v218_v15  ;;  %s2648_s11 = sshll.u32 %s3035_s10, 4  ;;  %s2649_s11 = int_to_ptr.vmem [resolvable:$true] %s2648_s11 }
  0x2d   :  { %2772 = vmatpush3.msra.mxu0 %v58_v4  ;;  %v3102_v26 = vsub.s32 %v280_v18, %v218_v15  ;;  %s2989_s12 = scalar_lea.vmem %s2649_s11, 256  ;;  %p2994_p2 = scmp.lt.s32.totalorder %s2649_s11, %s2649_s11 }
  0x2e   :  { %2774 = vmatmul.mubr.msk.f32.vlgmr.msra.gmra.mxu0 %vm62_vm0, %v57_v5  ;;  %2786 = vmatprep.subr.mxu0 %v3027_v8  ;;  %p2990_p1 = scmp.ne.s32.totalorder %s2649_s11, %s2989_s12  ;;  %p2995_p3 = scmp.lt.s32.totalorder %s2989_s12, %s2989_s12 }
  0x2f   :  { %2788 = vmatprep.mubr.msk.f32.mxu0 %vm3028_vm1, %v3027_v8 }
  0x30   :  { %p2996_p4 = por %p2995_p3, %p2994_p2 }
  0x32   :  { %p2997_p5 = pnand %p2996_p4, %p2990_p1 }
  0xee   :  { %v3076_v6 = vpop.f32.mrf.mxu0 }
  0xef   :  { %172 = vrot.lane.b32.xlu0 %v3076_v6, %s3020_s0  ;;  %166 = vrot.lane.b32.xlu1 %v3076_v6, %s3021_s2 }
  0xf0   :  { %v3082_v7 = vpop.f32.mrf.mxu0 }
  0xf3   :  { %184 = vrot.lane.b32.xlu0 %v3076_v6, %s3022_s28  ;;  %178 = vrot.lane.b32.xlu1 %v3076_v6, %s3023_s29 }
  0xf7   :  { %148 = vrot.lane.b32.xlu1 %v3076_v6, %s3024_s30  ;;  %164 = vrot.lane.b32.xlu0 %v3082_v7, %s3021_s2 }
  0xfb   :  { %176 = vrot.lane.b32.xlu1 %v3082_v7, %s3023_s29  ;;  %170 = vrot.lane.b32.xlu0 %v3082_v7, %s3020_s0 }
  0xff   :  { %182 = vrot.lane.b32.xlu1 %v3082_v7, %s3022_s28  ;;  %146 = vrot.lane.b32.xlu0 %v3082_v7, %s3024_s30 }
 0x103   :  { %152 = vrot.lane.b32.xlu1 %v3082_v7, %s3025_s4  ;;  %158 = vrot.lane.b32.xlu0 %v3082_v7, %s3026_s5 }
 0x107   :  { %160 = vrot.lane.b32.xlu1 %v3076_v6, %s3026_s5  ;;  %154 = vrot.lane.b32.xlu0 %v3076_v6, %s3025_s4 }
 0x161   :  { %v173_v16 = vpop.permute.xlu0 %172  ;;  %v167_v17 = vpop.permute.xlu1 %166 }
 0x165   :  { %v185_v20 = vpop.permute.xlu0 %184  ;;  %v179_v21 = vpop.permute.xlu1 %178 }
 0x166   :  { %v464_v22 = vcombine.low %v173_v16, %v185_v20  ;;  %v465_v23 = vcombine.high %v173_v16, %v185_v20  ;;  %v448_v24 = vcombine.low %v167_v17, %v179_v21  ;;  %v449_v25 = vcombine.high %v167_v17, %v179_v21 }
 0x168   :  { %v472_v27 = vrot.slane %v464_v22, %v3100_v19  ;;  %v479_v28 = vrot.slane %v465_v23, %v3100_v19  ;;  %v456_v29 = vrot.slane %v448_v24, %v3100_v19  ;;  %v463_v30 = vrot.slane %v449_v25, %v3100_v19 }
 0x169   :  { %v3108_v31 = vpop.permute.xlu1 %148  ;;  %v165_v32 = vpop.permute.xlu0 %164 }
 0x16a   :  { %v512_v33 = vcombine.low %v456_v29, %v472_v27  ;;  %v513_v34 = vcombine.high %v456_v29, %v472_v27  ;;  %v528_v35 = vcombine.low %v463_v30, %v479_v28  ;;  %v529_v36 = vcombine.high %v463_v30, %v479_v28 }
 0x16c   :  { %v520_v37 = vrot.slane %v512_v33, %v3102_v26  ;;  %v527_v38 = vrot.slane %v513_v34, %v3102_v26  ;;  %v536_v39 = vrot.slane %v528_v35, %v3102_v26  ;;  %v543_v40 = vrot.slane %v529_v36, %v3102_v26 }
 0x16d   :  { %v177_v41 = vpop.permute.xlu1 %176  ;;  %v171_v42 = vpop.permute.xlu0 %170 }
 0x16e   :  { %v2672_v43 = vcombine.low %v520_v37, %v527_v38  ;;  %v2674_v44 = vcombine.high %v520_v37, %v527_v38  ;;  %v2676_v45 = vcombine.low %v536_v39, %v543_v40  ;;  %v2678_v46 = vcombine.high %v536_v39, %v543_v40 }
 0x16f   :  { %v244_v47 = vcombine.low %v165_v32, %v177_v41  ;;  %v245_v50 = vcombine.high %v165_v32, %v177_v41 }
 0x170   :  { %v3115_v48 = vrot.slane %v2672_v43, %v3100_v19  ;;  %v3118_v49 = vrot.slane %v2674_v44, %v3100_v19  ;;  %v3121_v55 = vrot.slane %v2676_v45, %v3100_v19  ;;  %v3124_v56 = vrot.slane %v2678_v46, %v3100_v19 }
 0x171   :  { %v183_v51 = vpop.permute.xlu1 %182  ;;  %v147_v52 = vpop.permute.xlu0 %146  ;;  %v252_v57 = vrot.slane %v244_v47, %v3100_v19  ;;  %v259_v59 = vrot.slane %v245_v50, %v3100_v19 }
 0x172   :  { %v260_v53 = vcombine.low %v171_v42, %v183_v51  ;;  %v261_v54 = vcombine.high %v171_v42, %v183_v51  ;;  %v836_v58 = vcombine.low %v3115_v48, %v3118_v49  ;;  %v868_v15 = vcombine.low %v3121_v55, %v3124_v56 }
 0x174   :  { %v268_v60 = vrot.slane %v260_v53, %v3100_v19  ;;  %v275_v61 = vrot.slane %v261_v54, %v3100_v19  ;;  %v3143_v18 = vrot.slane %v836_v58, %v3102_v26 }
 0x175   :  { %v153_v62 = vpop.permute.xlu1 %152  ;;  %v159_v63 = vpop.permute.xlu0 %158 }
 0x176   :  { %v212_v0 = vcombine.low %v3082_v7, %v153_v62  ;;  %v213_v1 = vcombine.high %v3082_v7, %v153_v62  ;;  %v228_v2 = vcombine.low %v147_v52, %v159_v63  ;;  %v229_v3 = vcombine.high %v147_v52, %v159_v63 }
 0x177   :  { %v308_v4 = vcombine.low %v252_v57, %v268_v60  ;;  %v309_v5 = vcombine.high %v252_v57, %v268_v60  ;;  %v324_v9 = vcombine.low %v259_v59, %v275_v61  ;;  %v325_v10 = vcombine.high %v259_v59, %v275_v61 }
 0x178   :  { %v220_v11 = vrot.slane %v212_v0, %v3100_v19  ;;  %v227_v12 = vrot.slane %v213_v1, %v3100_v19  ;;  %v236_v13 = vrot.slane %v228_v2, %v3100_v19  ;;  %v243_v14 = vrot.slane %v229_v3, %v3100_v19 }
 0x179   :  { %v316_v16 = vrot.slane %v308_v4, %v3102_v26  ;;  %v323_v17 = vrot.slane %v309_v5, %v3102_v26  ;;  %v161_v24 = vpop.permute.xlu1 %160  ;;  %v155_v25 = vpop.permute.xlu0 %154  ;;  %v332_v27 = vrot.slane %v324_v9, %v3102_v26  ;;  %v339_v28 = vrot.slane %v325_v10, %v3102_v26 }
 0x17a   :  { %v276_v20 = vcombine.low %v220_v11, %v236_v13  ;;  %v277_v21 = vcombine.high %v220_v11, %v236_v13  ;;  %v292_v22 = vcombine.low %v227_v12, %v243_v14  ;;  %v293_v23 = vcombine.high %v227_v12, %v243_v14 }
 0x17b   :  { %v2664_v29 = vcombine.low %v316_v16, %v323_v17  ;;  %v2666_v30 = vcombine.high %v316_v16, %v323_v17  ;;  %v432_v36 = vcombine.low %v3108_v31, %v161_v24  ;;  %v433_v37 = vcombine.high %v3108_v31, %v161_v24 }
 0x17c   :  { %v284_v32 = vrot.slane %v276_v20, %v3102_v26  ;;  %v291_v33 = vrot.slane %v277_v21, %v3102_v26  ;;  %v300_v34 = vrot.slane %v292_v22, %v3102_v26  ;;  %v307_v35 = vrot.slane %v293_v23, %v3102_v26 }
 0x17d   :  { %v416_v38 = vcombine.low %v3076_v6, %v155_v25  ;;  %v417_v39 = vcombine.high %v3076_v6, %v155_v25  ;;  %v440_v44 = vrot.slane %v432_v36, %v3100_v19  ;;  %v447_v45 = vrot.slane %v433_v37, %v3100_v19 }
 0x17e   :  { %v2663_v40 = vcombine.low %v284_v32, %v291_v33  ;;  %v2665_v41 = vcombine.high %v284_v32, %v291_v33  ;;  %v2667_v42 = vcombine.low %v300_v34, %v307_v35  ;;  %v2669_v43 = vcombine.high %v300_v34, %v307_v35 }
 0x17f   :  { %v424_v46 = vrot.slane %v416_v38, %v3100_v19  ;;  %v431_v47 = vrot.slane %v417_v39, %v3100_v19  ;;  %v2668_v50 = vcombine.low %v332_v27, %v339_v28  ;;  %v2670_v51 = vcombine.high %v332_v27, %v339_v28 }
 0x180   :  { %v628_v31 = vrot.slane %v2663_v40, %v3100_v19  ;;  %v644_v52 = vrot.slane %v2665_v41, %v3100_v19  ;;  %v660_v59 = vrot.slane %v2667_v42, %v3100_v19  ;;  %v676_v60 = vrot.slane %v2669_v43, %v3100_v19 }
 0x181   :  { %v480_v53 = vcombine.low %v424_v46, %v440_v44  ;;  %v481_v54 = vcombine.high %v424_v46, %v440_v44  ;;  %v496_v57 = vcombine.low %v431_v47, %v447_v45  ;;  %v497_v58 = vcombine.high %v431_v47, %v447_v45 }
 0x182   :  { %v635_v61 = vrot.slane %v2664_v29, %v3100_v19  ;;  %v651_v62 = vrot.slane %v2666_v30, %v3100_v19  ;;  %v667_v3 = vrot.slane %v2668_v50, %v3100_v19  ;;  %v683_v4 = vrot.slane %v2670_v51, %v3100_v19 }
 0x183   :  { %v488_v63 = vrot.slane %v480_v53, %v3102_v26  ;;  %v495_v0 = vrot.slane %v481_v54, %v3102_v26  ;;  %v504_v1 = vrot.slane %v496_v57, %v3102_v26  ;;  %v511_v2 = vrot.slane %v497_v58, %v3102_v26 }
 0x184   :  { %v700_v5 = vcombine.low %v635_v61, %v651_v62  ;;  %v701_v9 = vcombine.high %v635_v61, %v651_v62  ;;  %v732_v16 = vcombine.low %v667_v3, %v683_v4  ;;  %v733_v17 = vcombine.high %v667_v3, %v683_v4 }
 0x185   :  { %v2671_v10 = vcombine.low %v488_v63, %v495_v0  ;;  %v2673_v11 = vcombine.high %v488_v63, %v495_v0  ;;  %v2675_v12 = vcombine.low %v504_v1, %v511_v2  ;;  %v2677_v13 = vcombine.high %v504_v1, %v511_v2 }
 0x186   :  { %v708_v14 = vrot.slane %v700_v5, %v3102_v26  ;;  %v684_v20 = vcombine.low %v628_v31, %v644_v52  ;;  %v740_v25 = vrot.slane %v732_v16, %v3102_v26  ;;  %v716_v28 = vcombine.low %v660_v59, %v676_v60 }
 0x187   :  { %v764_v21 = vrot.slane %v2671_v10, %v3100_v19  ;;  %v780_v22 = vrot.slane %v2673_v11, %v3100_v19  ;;  %v796_v23 = vrot.slane %v2675_v12, %v3100_v19  ;;  %v812_v24 = vrot.slane %v2677_v13, %v3100_v19 }
 0x188   :  { %v692_v27 = vrot.slane %v684_v20, %v3102_v26  ;;  %v876_v29 = vrot.slane %v868_v15, %v3102_v26  ;;  %v685_v30 = vcombine.high %v628_v31, %v644_v52  ;;  %v717_v32 = vcombine.high %v660_v59, %v676_v60 }
 0x189   :  { %v820_v33 = vcombine.low %v764_v21, %v780_v22  ;;  %v852_v34 = vcombine.low %v796_v23, %v812_v24  ;;  %v752_v35 = vcombine.low %v708_v14, %v740_v25  ;;  %v753_v36 = vcombine.high %v708_v14, %v740_v25 }
 0x18a   :  { %v724_v37 = vrot.slane %v716_v28, %v3102_v26  ;;  %v715_v38 = vrot.slane %v701_v9, %v3102_v26  ;;  %v747_v39 = vrot.slane %v733_v17, %v3102_v26  ;;  %v837_v42 = vcombine.high %v3115_v48, %v3118_v49 }
 0x18b   :  { %v828_v40 = vrot.slane %v820_v33, %v3102_v26  ;;  %v860_v41 = vrot.slane %v852_v34, %v3102_v26  ;;  %2777 = vmatpush3.xpose.msk.msra.mxu1 %vm1028_vm2, %v752_v35  ;;  %2787 = vmatpush3.xpose.msk.msra.mxu0 %vm1028_vm2, %v753_v36  ;;  %v699_v44 = vrot.slane %v685_v30, %v3102_v26 }
 0x18c   :  { %v748_v15 = vcombine.low %v692_v27, %v724_v37  ;;  %v749_v43 = vcombine.high %v692_v27, %v724_v37  ;;  %2781 = vmatprep.subr.mxu1 %v3027_v8  ;;  %2796 = vmatprep.subr.mxu0 %v3027_v8  ;;  %v731_v45 = vrot.slane %v717_v32, %v3102_v26 }
 0x18d   :  { %v869_v46 = vcombine.high %v3121_v55, %v3124_v56  ;;  %v888_v47 = vcombine.low %v3143_v18, %v876_v29  ;;  %v754_v48 = vcombine.low %v715_v38, %v747_v39  ;;  %v884_v49 = vcombine.low %v828_v40, %v860_v41 }
 0x18e   :  { %2779 = vmatmul.mubr.msk.f32.vlgmr.msra.gmra.mxu1 %vm1028_vm2, %v748_v15  ;;  %2789 = vmatmul.mubr.msk.f32.vlgmr.msra.gmra.mxu0 %vm1028_vm2, %v749_v43  ;;  %v851_v50 = vrot.slane %v837_v42, %v3102_v26  ;;  %v821_v51 = vcombine.high %v764_v21, %v780_v22  ;;  %v853_v31 = vcombine.high %v796_v23, %v812_v24 }
 0x18f   :  { %2782 = vmatpush3.xpose.msk.msra.mxu1 %vm1028_vm2, %v888_v47  ;;  %2797 = vmatpush3.xpose.msk.msra.mxu0 %vm1028_vm2, %v754_v48  ;;  %v750_v55 = vcombine.low %v699_v44, %v731_v45  ;;  %v889_v56 = vcombine.high %v3143_v18, %v876_v29  ;;  %v755_v52 = vcombine.high %v715_v38, %v747_v39 }
 0x190   :  { %2783 = vmatprep.mubr.msk.f32.mxu1 %vm3028_vm1, %v3027_v8  ;;  %2791 = vmatprep.subr.mxu1 %v3027_v8  ;;  %v883_v53 = vrot.slane %v869_v46, %v3102_v26  ;;  %v885_v54 = vcombine.high %v828_v40, %v860_v41  ;;  %v751_v57 = vcombine.high %v699_v44, %v731_v45 }
 0x191   :  { %2798 = vmatprep.mubr.msk.f32.mxu0 %vm3028_vm1, %v3027_v8  ;;  %2806 = vmatprep.subr.mxu0 %v3027_v8  ;;  %v835_v18 = vrot.slane %v821_v51, %v3102_v26  ;;  %v867_v58 = vrot.slane %v853_v31, %v3102_v26 }
 0x192   :  { %2784 = vmatmul.mubr.msk.f32.vlgmr.msra.gmra.mxu1 %vm1028_vm2, %v884_v49  ;;  %2799 = vmatmul.mubr.msk.f32.vlgmr.msra.gmra.mxu0 %vm1028_vm2, %v750_v55  ;;  %v890_v59 = vcombine.low %v851_v50, %v883_v53  ;;  %v891_v61 = vcombine.high %v851_v50, %v883_v53 }
 0x193   :  { %2792 = vmatpush3.xpose.msk.msra.mxu1 %vm1028_vm2, %v889_v56  ;;  %2807 = vmatpush3.xpose.msk.msra.mxu0 %vm1028_vm2, %v755_v52  ;;  %v886_v60 = vcombine.low %v835_v18, %v867_v58  ;;  %v887_v62 = vcombine.high %v835_v18, %v867_v58 }
 0x194   :  { %2793 = vmatprep.mubr.msk.f32.mxu1 %vm3028_vm1, %v3027_v8  ;;  %2801 = vmatprep.subr.mxu1 %v3027_v8 }
 0x195   :  { %2808 = vmatprep.mubr.msk.f32.mxu0 %vm3028_vm1, %v3027_v8  ;;  %2816 = vmatprep.subr.mxu0 %v3027_v8 }
 0x196   :  { %2794 = vmatmul.mubr.msk.f32.vlgmr.msra.gmra.mxu1 %vm1028_vm2, %v885_v54  ;;  %2809 = vmatmul.mubr.msk.f32.vlgmr.msra.gmra.mxu0 %vm1028_vm2, %v751_v57 }
 0x197   :  { %2802 = vmatpush3.xpose.msk.msra.mxu1 %vm1028_vm2, %v890_v59  ;;  %2803 = vmatprep.mubr.msk.f32.mxu1 %vm3028_vm1, %v3027_v8 }
 0x198   :  { %2811 = vmatprep.subr.mxu1 %v3027_v8  ;;  %2818 = vmatprep.mubr.msk.f32.mxu0 %vm3028_vm1, %v3027_v8 }
 0x19a   :  { %2804 = vmatmul.mubr.msk.f32.vlgmr.msra.gmra.mxu1 %vm1028_vm2, %v886_v60 }
 0x19b   :  { %2812 = vmatpush3.xpose.msk.msra.mxu1 %vm1028_vm2, %v891_v61  ;;  %2813 = vmatprep.mubr.msk.f32.mxu1 %vm3028_vm1, %v3027_v8 }
 0x19c   :  { %2821 = vmatprep.subr.mxu1 %v3027_v8 }
 0x19e   :  { %2814 = vmatmul.mubr.msk.f32.vlgmr.msra.gmra.mxu1 %vm1028_vm2, %v887_v62 }
 0x19f   :  { %2823 = vmatprep.mubr.msk.f32.mxu1 %vm3028_vm1, %v3027_v8 }
 0x24e   :  { %v1101_v63 = vpop.f32.mrf.mxu1  ;;  %v1253_v0 = vpop.f32.mrf.mxu0 }
 0x24f   :  { %v1637_v1 = vsel %vm1028_vm2, %v1101_v63, -inf  ;;  %v1643_v9 = vsel %vm1028_vm2, %v1253_v0, -inf }
 0x250   :  { %v2790_v2 = vpop.f32.mrf.mxu0  ;;  %1638 = vmax.xlane.f32.xlu0 %v1637_v1  ;;  %v2780_v3 = vpop.f32.mrf.mxu1 }
 0x252   :  { %v1177_v4 = vpop.f32.mrf.mxu1  ;;  %v1405_v5 = vpop.f32.mrf.mxu0 }
 0x253   :  { %v1640_v10 = vsel %vm1028_vm2, %v1177_v4, -inf  ;;  %v1649_v16 = vsel %vm1028_vm2, %v1405_v5, -inf }
 0x254   :  { %v2800_v11 = vpop.f32.mrf.mxu0  ;;  %1644 = vmax.xlane.f32.xlu0 %v1643_v9  ;;  %1641 = vmax.xlane.f32.xlu1 %v1640_v10  ;;  %v2785_v12 = vpop.f32.mrf.mxu1 }
 0x256   :  { %v1329_v13 = vpop.f32.mrf.mxu1  ;;  %v3242_v14 = vpop.f32.mrf.mxu0 }
 0x257   :  { %v1646_v17 = vsel %vm1028_vm2, %v1329_v13, -inf  ;;  %v1655_v23 = vsel %vm1028_vm2, %v3242_v14, -inf }
 0x258   :  { %v2810_v20 = vpop.f32.mrf.mxu0  ;;  %1650 = vmax.xlane.f32.xlu1 %v1649_v16  ;;  %1647 = vmax.xlane.f32.xlu0 %v1646_v17  ;;  %v2795_v21 = vpop.f32.mrf.mxu1 }
 0x25a   :  { %v3246_v22 = vpop.f32.mrf.mxu1 }
 0x25b   :  { %v1652_v28 = vsel %vm1028_vm2, %v3246_v22, -inf }
 0x25c   :  { %1656 = vmax.xlane.f32.xlu1 %v1655_v23  ;;  %v2805_v24 = vpop.f32.mrf.mxu1 }
 0x25e   :  { %v3250_v25 = vpop.f32.mrf.mxu1 }
 0x25f   :  { %v1658_v29 = vsel %vm1028_vm2, %v3250_v25, -inf }
 0x260   :  { %v2815_v27 = vpop.f32.mrf.mxu1 }
 0x26d   :  { %194 = vrot.lane.b32.xlu1 %v3082_v7, %s3031_s6 }
 0x26e   :  { %188 = vrot.lane.b32.xlu0 %v3082_v7, %s3032_s7 }
 0x271   :  { %200 = vrot.lane.b32.xlu1 %v3082_v7, %s3033_s8 }
 0x272   :  { %206 = vrot.lane.b32.xlu0 %v3082_v7, %s3034_s9 }
 0x276   :  { %190 = vrot.lane.b32.xlu0 %v3076_v6, %s3032_s7 }
 0x27a   :  { %196 = vrot.lane.b32.xlu0 %v3076_v6, %s3031_s6 }
 0x299   :  { %1653 = vmax.xlane.f32.xlu0 %v1652_v28 }
 0x29d   :  { %1659 = vmax.xlane.f32.xlu0 %v1658_v29 }
 0x2b3   :  { %202 = vrot.lane.b32.xlu0 %v3076_v6, %s3033_s8 }
 0x2d9   :  { %v1639_v30 = vpop.xlane.xlu0 %1638 }
 0x2da   :  { %v1661_v32 = vsub.f32 %v1101_v63, %v1639_v30 }
 0x2dc   :  { %v1669_v33 = vmul.f32 1.442695, %v1661_v32 }
 0x2dd   :  { %v1642_v34 = vpop.xlane.xlu1 %1641  ;;  %v1645_v35 = vpop.xlane.xlu0 %1644 }
 0x2de   :  { %2897 = vpow2.f32 %v1669_v33  ;;  %v1662_v7 = vsub.f32 %v1177_v4, %v1642_v34  ;;  %v1663_v36 = vsub.f32 %v1253_v0, %v1645_v35 }
 0x2e0   :  { %v1671_v37 = vmul.f32 1.442695, %v1662_v7  ;;  %v1673_v38 = vmul.f32 1.442695, %v1663_v36 }
 0x2e1   :  { %v1651_v39 = vpop.xlane.xlu1 %1650  ;;  %v1648_v40 = vpop.xlane.xlu0 %1647 }
 0x2e2   :  { %2899 = vpow2.f32 %v1671_v37  ;;  %v1665_v41 = vsub.f32 %v1405_v5, %v1651_v39  ;;  %v1664_v42 = vsub.f32 %v1329_v13, %v1648_v40 }
 0x2e3   :  { %2901 = vpow2.f32 %v1673_v38 }
 0x2e4   :  { %v1677_v15 = vmul.f32 1.442695, %v1665_v41  ;;  %v1675_v43 = vmul.f32 1.442695, %v1664_v42 }
 0x2e5   :  { %v1657_v44 = vpop.xlane.xlu1 %1656  ;;  %v189_v45 = vpop.permute.xlu0 %188 }
 0x2e6   :  { %2903 = vpow2.f32 %v1677_v15  ;;  %v1667_v39 = vsub.f32 %v3242_v14, %v1657_v44 }
 0x2e7   :  { %2905 = vpow2.f32 %v1675_v43 }
 0x2e8   :  { %v1681_v40 = vmul.f32 1.442695, %v1667_v39 }
 0x2e9   :  { %v195_v46 = vpop.permute.xlu1 %194  ;;  %v207_v47 = vpop.permute.xlu0 %206 }
 0x2ea   :  { %v364_v49 = vcombine.low %v195_v46, %v207_v47  ;;  %v365_v50 = vcombine.high %v195_v46, %v207_v47  ;;  %2907 = vpow2.f32 %v1681_v40 }
 0x2eb   :  { %v3264_v48 = vpop.eup %2897 }
 0x2ec   :  { %v1685_v51 = vsel %vm1028_vm2, %v3264_v48, 0.0  ;;  %v372_v53 = vrot.slane %v364_v49, %v3100_v19  ;;  %v379_v57 = vrot.slane %v365_v50, %v3100_v19 }
 0x2ed   :  { %v201_v31 = vpop.permute.xlu1 %200  ;;  %1686 = vadd.xlane.f32.xlu1 %v1685_v51  ;;  %v191_v41 = vpop.permute.xlu0 %190 }
 0x2ee   :  { %v348_v55 = vcombine.low %v189_v45, %v201_v31  ;;  %v349_v56 = vcombine.high %v189_v45, %v201_v31 }
 0x2ef   :  { %v3268_v52 = vpop.eup %2899 }
 0x2f0   :  { %v3271_v54 = vpop.eup %2901  ;;  %v356_v18 = vrot.slane %v348_v55, %v3100_v19  ;;  %v363_v58 = vrot.slane %v349_v56, %v3100_v19  ;;  %v1688_v59 = vsel %vm1028_vm2, %v3268_v52, 0.0 }
 0x2f1   :  { %1689 = vadd.xlane.f32.xlu0 %v1688_v59  ;;  %v1691_v60 = vsel %vm1028_vm2, %v3271_v54, 0.0  ;;  %v197_v42 = vpop.permute.xlu0 %196 }
 0x2f2   :  { %v380_v61 = vcombine.low %v356_v18, %v372_v53  ;;  %v381_v62 = vcombine.high %v356_v18, %v372_v53  ;;  %v396_v63 = vcombine.low %v363_v58, %v379_v57  ;;  %v397_v0 = vcombine.high %v363_v58, %v379_v57  ;;  %1692 = vadd.xlane.f32.xlu1 %v1691_v60 }
 0x2f3   :  { %v3280_v1 = vpop.eup %2903 }
 0x2f4   :  { %v3282_v2 = vpop.eup %2905  ;;  %v388_v3 = vrot.slane %v380_v61, %v3102_v26  ;;  %v395_v4 = vrot.slane %v381_v62, %v3102_v26  ;;  %v404_v5 = vrot.slane %v396_v63, %v3102_v26  ;;  %v411_v9 = vrot.slane %v397_v0, %v3102_v26 }
 0x2f5   :  { %v1697_v10 = vsel %vm1028_vm2, %v3280_v1, 0.0  ;;  %v1694_v11 = vsel %vm1028_vm2, %v3282_v2, 0.0 }
 0x2f6   :  { %v892_v12 = vcombine.low %v388_v3, %v395_v4  ;;  %v2679_v13 = vcombine.high %v388_v3, %v395_v4  ;;  %v908_v16 = vcombine.low %v404_v5, %v411_v9  ;;  %v2680_v17 = vcombine.high %v404_v5, %v411_v9  ;;  %1698 = vadd.xlane.f32.xlu1 %v1697_v10 }
 0x2f7   :  { %1695 = vadd.xlane.f32.xlu0 %v1694_v11  ;;  %v3314_v49 = vpop.eup %2907 }
 0x2f8   :  { %v899_v20 = vrot.slane %v892_v12, %v3100_v19  ;;  %v907_v21 = vrot.slane %v2679_v13, %v3100_v19  ;;  %v915_v23 = vrot.slane %v908_v16, %v3100_v19  ;;  %v923_v24 = vrot.slane %v2680_v17, %v3100_v19 }
 0x2fa   :  { %v924_v27 = vcombine.low %v899_v20, %v907_v21  ;;  %v940_v28 = vcombine.low %v915_v23, %v923_v24  ;;  %v925_v29 = vcombine.high %v899_v20, %v907_v21  ;;  %v941_v30 = vcombine.high %v915_v23, %v923_v24 }
 0x2fc   :  { %v932_v32 = vrot.slane %v924_v27, %v3102_v26  ;;  %v948_v33 = vrot.slane %v940_v28, %v3102_v26  ;;  %v3299_v34 = vrot.slane %v925_v29, %v3102_v26  ;;  %v3302_v35 = vrot.slane %v941_v30, %v3102_v26 }
 0x2fe   :  { %v956_v7 = vcombine.low %v932_v32, %v948_v33  ;;  %v957_v36 = vcombine.high %v932_v32, %v948_v33  ;;  %v958_v37 = vcombine.low %v3299_v34, %v3302_v35  ;;  %v959_v38 = vcombine.high %v3299_v34, %v3302_v35 }
 0x300   :  { %2817 = vmatpush3.msra.mxu0 %v956_v7 }
 0x301   :  { %2826 = vmatprep.subr.mxu0 %v3027_v8 }
 0x30d   :  { %208 = vrot.lane.b32.xlu0 %v3076_v6, %s3034_s9  ;;  %v1703_v6 = vsel %vm1028_vm2, %v3314_v49, 0.0 }
 0x322   :  { %v1654_v15 = vpop.xlane.xlu0 %1653 }
 0x323   :  { %v1666_v43 = vsub.f32 %v3246_v22, %v1654_v15 }
 0x325   :  { %v1679_v45 = vmul.f32 1.442695, %v1666_v43 }
 0x326   :  { %v1660_v46 = vpop.xlane.xlu0 %1659 }
 0x327   :  { %2909 = vpow2.f32 %v1679_v45  ;;  %v1668_v47 = vsub.f32 %v3250_v25, %v1660_v46 }
 0x329   :  { %v1683_v50 = vmul.f32 1.442695, %v1668_v47 }
 0x32a   :  { %v203_v25 = vpop.permute.xlu0 %202 }
 0x32b   :  { %2911 = vpow2.f32 %v1683_v50  ;;  %v552_v18 = vcombine.low %v191_v41, %v203_v25  ;;  %v553_v58 = vcombine.high %v191_v41, %v203_v25 }
 0x32c   :  { %1704 = vadd.xlane.f32.xlu0 %v1703_v6 }
 0x32d   :  { %v560_v0 = vrot.slane %v552_v18, %v3100_v19  ;;  %v567_v3 = vrot.slane %v553_v58, %v3100_v19 }
 0x334   :  { %v3318_v14 = vpop.eup %2909 }
 0x335   :  { %v1700_v44 = vsel %vm1028_vm2, %v3318_v14, 0.0 }
 0x336   :  { %1701 = vadd.xlane.f32.xlu1 %v1700_v44 }
 0x338   :  { %v3322_v22 = vpop.eup %2911 }
 0x339   :  { %v1706_v51 = vsel %vm1028_vm2, %v3322_v22, 0.0 }
 0x33a   :  { %1707 = vadd.xlane.f32.xlu1 %v1706_v51 }
 0x376   :  { %v1687_v31 = vpop.xlane.xlu1 %1686 }
 0x377   :  { %2913 = vrcp.f32 %v1687_v31 }
 0x37a   :  { %v1690_v55 = vpop.xlane.xlu0 %1689 }
 0x37b   :  { %v1693_v56 = vpop.xlane.xlu1 %1692 }
 0x37c   :  { %2915 = vrcp.f32 %v1693_v56  ;;  %v2311_v56 = vld [vmem:[#allocation7 + $0x10] sm:$0xff] }
 0x37f   :  { %v1699_v53 = vpop.xlane.xlu1 %1698 }
 0x380   :  { %2917 = vrcp.f32 %v1699_v53  ;;  %v1696_v57 = vpop.xlane.xlu0 %1695 }
 0x381   :  { %2919 = vrcp.f32 %v1690_v55  ;;  %v2309_v55 = vld [vmem:[#allocation7] sm:$0xff] }
 0x382   :  { %2921 = vrcp.f32 %v1696_v57 }
 0x384   :  { %v2914_v59 = vpop.eup %2913  ;;  %v209_v60 = vpop.permute.xlu0 %208 }
 0x385   :  { %v568_v61 = vcombine.low %v197_v42, %v209_v60  ;;  %v569_v62 = vcombine.high %v197_v42, %v209_v60  ;;  %v1717_v63 = vmul.f32 %v2914_v59, %v3264_v48 }
 0x387   :  { %v576_v4 = vrot.slane %v568_v61, %v3100_v19  ;;  %v583_v5 = vrot.slane %v569_v62, %v3100_v19  ;;  %2819 = vmatmul.mubr.msk.f32.vlgmr.msra.gmra.mxu0 %vm1028_vm2, %v1717_v63 }
 0x388   :  { %2827 = vmatpush3.msra.mxu0 %v957_v36  ;;  %2828 = vmatprep.mubr.msk.f32.mxu0 %vm3028_vm1, %v3027_v8 }
 0x389   :  { %v2916_v9 = vpop.eup %2915  ;;  %v584_v10 = vcombine.low %v560_v0, %v576_v4  ;;  %v585_v11 = vcombine.high %v560_v0, %v576_v4  ;;  %v600_v12 = vcombine.low %v567_v3, %v583_v5  ;;  %v601_v48 = vcombine.high %v567_v3, %v583_v5  ;;  %2836 = vmatprep.subr.mxu0 %v3027_v8 }
 0x38a   :  { %v1719_v13 = vmul.f32 %v2916_v9, %v3271_v54 }
 0x38b   :  { %v592_v16 = vrot.slane %v584_v10, %v3102_v26  ;;  %v599_v17 = vrot.slane %v585_v11, %v3102_v26  ;;  %v608_v20 = vrot.slane %v600_v12, %v3102_v26  ;;  %v615_v21 = vrot.slane %v601_v48, %v3102_v26 }
 0x38c   :  { %2829 = vmatmul.mubr.msk.f32.vlgmr.msra.gmra.mxu0 %vm1028_vm2, %v1719_v13 }
 0x38d   :  { %v2918_v23 = vpop.eup %2917  ;;  %v960_v24 = vcombine.low %v592_v16, %v599_v17  ;;  %v2681_v27 = vcombine.high %v592_v16, %v599_v17  ;;  %v976_v28 = vcombine.low %v608_v20, %v615_v21  ;;  %v2682_v29 = vcombine.high %v608_v20, %v615_v21  ;;  %2837 = vmatpush3.msra.mxu0 %v958_v37 }
 0x38e   :  { %2838 = vmatprep.mubr.msk.f32.mxu0 %vm3028_vm1, %v3027_v8  ;;  %2846 = vmatprep.subr.mxu0 %v3027_v8  ;;  %v1721_v54 = vmul.f32 %v2918_v23, %v3280_v1  ;;  %v2920_v1 = vpop.eup %2919 }
 0x38f   :  { %v967_v30 = vrot.slane %v960_v24, %v3100_v19  ;;  %v975_v32 = vrot.slane %v2681_v27, %v3100_v19  ;;  %v983_v33 = vrot.slane %v976_v28, %v3100_v19  ;;  %v991_v7 = vrot.slane %v2682_v29, %v3100_v19  ;;  %v2922_v43 = vpop.eup %2921 }
 0x390   :  { %2839 = vmatmul.mubr.msk.f32.vlgmr.msra.gmra.mxu0 %vm1028_vm2, %v1721_v54  ;;  %v1718_v19 = vmul.f32 %v2920_v1, %v3268_v52 }
 0x391   :  { %2847 = vmatpush3.msra.mxu0 %v959_v38  ;;  %v992_v36 = vcombine.low %v967_v30, %v975_v32  ;;  %v1008_v37 = vcombine.low %v983_v33, %v991_v7  ;;  %2848 = vmatprep.mubr.msk.f32.mxu0 %vm3028_vm1, %v3027_v8  ;;  %v993_v41 = vcombine.high %v967_v30, %v975_v32 }
 0x392   :  { %v1009_v42 = vcombine.high %v983_v33, %v991_v7  ;;  %v1720_v38 = vmul.f32 %v2922_v43, %v3282_v2 }
 0x393   :  { %v1000_v39 = vrot.slane %v992_v36, %v3102_v26  ;;  %v1016_v40 = vrot.slane %v1008_v37, %v3102_v26  ;;  %v1007_v34 = vrot.slane %v993_v41, %v3102_v26 }
 0x394   :  { %v1023_v35 = vrot.slane %v1009_v42, %v3102_v26 }
 0x395   :  { %v1024_v15 = vcombine.low %v1000_v39, %v1016_v40  ;;  %v1025_v45 = vcombine.high %v1000_v39, %v1016_v40 }
 0x396   :  { %v1026_v52 = vcombine.low %v1007_v34, %v1023_v35  ;;  %v1027_v51 = vcombine.high %v1007_v34, %v1023_v35 }
 0x397   :  { %2822 = vmatpush3.msra.mxu1 %v1024_v15 }
 0x398   :  { %2824 = vmatmul.mubr.msk.f32.vlgmr.msra.gmra.mxu1 %vm1028_vm2, %v1718_v19  ;;  %2831 = vmatprep.subr.mxu1 %v3027_v8 }
 0x399   :  { %2832 = vmatpush3.msra.mxu1 %v1025_v45  ;;  %2833 = vmatprep.mubr.msk.f32.mxu1 %vm3028_vm1, %v3027_v8 }
 0x39a   :  { %2841 = vmatprep.subr.mxu1 %v3027_v8 }
 0x39c   :  { %2834 = vmatmul.mubr.msk.f32.vlgmr.msra.gmra.mxu1 %vm1028_vm2, %v1720_v38 }
 0x39d   :  { %2842 = vmatpush3.msra.mxu1 %v1026_v52  ;;  %2843 = vmatprep.mubr.msk.f32.mxu1 %vm3028_vm1, %v3027_v8 }
 0x39e   :  { %2851 = vmatprep.subr.mxu1 %v3027_v8 }
 0x3b5   :  { %v1705_v26 = vpop.xlane.xlu0 %1704 }
 0x3b6   :  { %2923 = vrcp.f32 %v1705_v26 }
 0x3bf   :  { %v1702_v46 = vpop.xlane.xlu1 %1701 }
 0x3c0   :  { %2925 = vrcp.f32 %v1702_v46 }
 0x3c3   :  { %v2924_v47 = vpop.eup %2923  ;;  %v1708_v50 = vpop.xlane.xlu1 %1707 }
 0x3c4   :  { %2927 = vrcp.f32 %v1708_v50  ;;  %v1723_v6 = vmul.f32 %v2924_v47, %v3314_v49  ;;  %v2310_v49 = vld [vmem:[#allocation7 + $0x8] sm:$0xff] }
 0x3c5   :  { %2856 = vmatprep.subr.mxu0 %v2310_v49 }
 0x3c6   :  { %2849 = vmatmul.mubr.msk.f32.vlgmr.msra.gmra.mxu0 %vm1028_vm2, %v1723_v6 }
 0x3c7   :  { %2857 = vmatpush3.msra.mxu0 %v2310_v49 }
 0x3c8   :  { %2866 = vmatprep.subr.mxu0 %v2311_v56 }
 0x3cd   :  { %v2926_v2 = vpop.eup %2925 }
 0x3ce   :  { %v1722_v44 = vmul.f32 %v2926_v2, %v3318_v14  ;;  %v2312_v14 = vld [vmem:[#allocation7 + $0x18] sm:$0xff] }
 0x3d0   :  { %2844 = vmatmul.mubr.msk.f32.vlgmr.msra.gmra.mxu1 %vm1028_vm2, %v1722_v44 }
 0x3d1   :  { %v2928_v25 = vpop.eup %2927  ;;  %2852 = vmatpush3.msra.mxu1 %v1027_v51  ;;  %2853 = vmatprep.mubr.msk.f32.mxu1 %vm3028_vm1, %v3027_v8 }
 0x3d2   :  { %v1724_v31 = vmul.f32 %v2928_v25, %v3322_v22  ;;  %2861 = vmatprep.subr.mxu1 %v2309_v55 }
 0x3d4   :  { %2854 = vmatmul.mubr.msk.f32.vlgmr.msra.gmra.mxu1 %vm1028_vm2, %v1724_v31 }
 0x3d5   :  { %2862 = vmatpush3.msra.mxu1 %v2309_v55 }
 0x3d6   :  { %2871 = vmatprep.subr.mxu1 %v2312_v14 }
 0x447   :  { %v1794_v53 = vpop.f32.mrf.mxu0 }
 0x448   :  { %2863 = vmatprep.mubr.msk.f32.mxu1 %vm1028_vm2, %v1794_v53 }
 0x449   :  { %v2820_v57 = vpop.f32.mrf.mxu0 }
 0x44c   :  { %v1940_v18 = vpop.f32.mrf.mxu0 }
 0x44d   :  { %2858 = vmatprep.mubr.msk.f32.mxu0 %vm1028_vm2, %v1940_v18 }
 0x44e   :  { %v2830_v8 = vpop.f32.mrf.mxu0 }
 0x450   :  { %v2086_v22 = vpop.f32.mrf.mxu0 }
 0x452   :  { %v2840_v58 = vpop.f32.mrf.mxu0 }
 0x458   :  { %v1867_v59 = vpop.f32.mrf.mxu1 }
 0x459   :  { %2864 = vmatmul.mubr.msk.f32.vlgmr.msra.gmra.mxu1 %vm1028_vm2, %v1867_v59 }
 0x45a   :  { %v2825_v60 = vpop.f32.mrf.mxu1  ;;  %2872 = vmatpush3.msra.mxu1 %v2312_v14 }
 0x45c   :  { %v2013_v61 = vpop.f32.mrf.mxu1 }
 0x45d   :  { %2859 = vmatmul.mubr.msk.f32.vlgmr.msra.gmra.mxu0 %vm1028_vm2, %v2013_v61 }
 0x45e   :  { %v2835_v62 = vpop.f32.mrf.mxu1  ;;  %2868 = vmatprep.mubr.msk.f32.mxu0 %vm1028_vm2, %v2086_v22  ;;  %2867 = vmatpush3.msra.mxu0 %v2311_v56 }
 0x486   :  { %v2232_v63 = vpop.f32.mrf.mxu0 }
 0x487   :  { %2873 = vmatprep.mubr.msk.f32.mxu1 %vm1028_vm2, %v2232_v63 }
 0x488   :  { %v2850_v0 = vpop.f32.mrf.mxu0 }
 0x490   :  { %v2159_v3 = vpop.f32.mrf.mxu1 }
 0x491   :  { %2869 = vmatmul.mubr.msk.f32.vlgmr.msra.gmra.mxu0 %vm1028_vm2, %v2159_v3 }
 0x492   :  { %v2845_v4 = vpop.f32.mrf.mxu1 }
 0x494   :  { %v2305_v5 = vpop.f32.mrf.mxu1 }
 0x495   :  { %2874 = vmatmul.mubr.msk.f32.vlgmr.msra.gmra.mxu1 %vm1028_vm2, %v2305_v5 }
 0x496   :  { %v2855_v9 = vpop.f32.mrf.mxu1 }
 0x519   :  { %v2865_v11 = vpop.f32.mrf.mxu1 }
 0x51b   :  { %v2466_v16 = vpop.f32.mrf.mxu1 }
 0x51d   :  { %v2860_v10 = vpop.f32.mrf.mxu0 }
 0x51e   :  { %v2472_v13 = vadd.f32 %v2865_v11, %v2860_v10 }
 0x51f   :  { %v2385_v12 = vpop.f32.mrf.mxu0 }
 0x520   :  { %v2467_v20 = vadd.f32 %v2466_v16, %v2385_v12 }
 0x551   :  { %v2870_v48 = vpop.f32.mrf.mxu0 }
 0x552   :  { %v2557_v21 = vadd.f32 %v2870_v48, %v2472_v13 }
 0x553   :  { %v2547_v17 = vpop.f32.mrf.mxu0 }
 0x554   :  { %v2556_v24 = vadd.f32 %v2547_v17, %v2467_v20 }
 0x555   :  { %v2875_v23 = vpop.f32.mrf.mxu1 }
 0x556   :  { %v2640_v27 = vadd.f32 %v2875_v23, %v2557_v21 }
 0x557   :  { %v2630_v28 = vpop.f32.mrf.mxu1 }
 0x558   :  { %2642 = vst.msk [vmem:[#allocation8 + $0x8] sm:$0xff] %vm62_vm0, %v2640_v27  ;;  %v2639_v29 = vadd.f32 %v2630_v28, %v2556_v24 }
 0x55a   :  { %2641 = vst.msk [vmem:[#allocation8] sm:$0xff] %vm62_vm0, %v2639_v29 }
 0x55b   :  { %3000 = shalt.err (!%p2997_p5)
}
 0x55c   :  { %2654 = dma.vmem_to_hbm [thread:$0]  %s2649_s11, 256, %s3400_s3, [#allocation4], %s3017_s17, %s3017_s17, %s3018_s18  }
 0x55d   :  { %3013 = dma.done.wait [#allocation4], 256  }
 0x55e   :  { %3014 = vsyncadd [#allocation4], 4294967040 }
 0x55f   :  { %2658 = vsyncpa [#allocation3], 1 }
 0x560   :  { %2659 = vsyncpa [#allocation6], 1 }
 0x561   :  { %2660 = vsyncpa [#allocation4], 1 }

</bundles_post_ra>
